<compile_context>
chip_gen: v7x
topology: tpu7x:2x2x1
jax: 0.10.0
libtpu: 0.0.40
codegen_flags: <defaults>
</compile_context>

<pallas_src>
import functools

import jax
import jax.numpy as jnp
from jax.experimental import pallas as pl
from jax.experimental.pallas import tpu as pltpu

_ROW_ALIGN = 16  # bf16 sublane packing: keep packed-weight sections 16-row aligned


def _round_up(n, m):
    return ((n + m - 1) // m) * m


def _conp_hist_critic_kernel(T, TB, twoD, o2, o3, wcol,
                             x_ref, wp_ref, bp_ref, out_ref):
    """One batch tile of TB histories.

    x_ref   : (T*TB, 2D) bf16  -- concatenated [observed, mask] rows, ordered
                                  time-major within the tile: row = t*TB + b
    wp_ref  : (Rw, wcol) bf16  -- packed Linear weights, 128-lane padded (resident)
    bp_ref  : (8, wcol)  f32   -- packed biases + head weights (resident)
    out_ref : (TB, 1)    f32
    """
    x = x_ref[...]                                     # (T*TB, 2D) bf16
    bp = bp_ref[...]                                   # (8, wcol)  f32

    # embed layer 1 (single K=2D matmul, lane-dense 128-wide output)
    h = jnp.dot(x, wp_ref[0:twoD, :], preferred_element_type=jnp.float32)
    h = jnp.maximum(h + bp[0:1, :], 0.0).astype(jnp.bfloat16)

    # embed layer 2 (K = wcol; padded rows/cols are zero so result is exact)
    h = jnp.dot(h, wp_ref[o2:o2 + wcol, :], preferred_element_type=jnp.float32)
    h = jnp.maximum(h + bp[1:2, :], 0.0)               # (T*TB, wcol) f32

    # .mean(dim=1): rows are (t, b)-ordered, so the time mean is T static
    # (TB, wcol) slab adds on the VPU (the avg-matrix matmul is removed).
    e = h[0:TB, :]
    for t in range(1, T):
        e = e + h[t * TB:(t + 1) * TB, :]
    e = (e * (1.0 / T)).astype(jnp.bfloat16)           # (TB, wcol)

    # critic hidden layer
    c = jnp.dot(e, wp_ref[o3:o3 + wcol, :], preferred_element_type=jnp.float32)
    c = jnp.maximum(c + bp[2:3, :], 0.0)               # (TB, wcol) f32

    # critic output (width 1): VPU multiply + lane reduce, no N=1 MXU matmul.
    v = jnp.sum(c * bp[4:5, :], axis=1, keepdims=True)  # (TB, 1) f32
    out_ref[...] = v + bp[3:4, 0:1]


def pack_params(params):
    """Pack the four Linear layers into a 128-lane-padded bf16 weight slab and
    an f32 slab holding the biases and the (width-1) head weights.

    Call ONCE (e.g. at init) -- the packed slabs are what the forward takes.
    Layout (row offsets are deterministic so the wrapper can re-derive them):
      wp[0        : 2D      , :H1] = w1
      wp[o2       : o2 + H1 , :H2] = w2      o2 = round_up(2D, 16)
      wp[o3       : o3 + H2 , :C1] = w3      o3 = o2 + wcol
      bp[0..2] = b1, b2, b3 ; bp[3, 0] = b4 ; bp[4, :C1] = w4[:, 0]
    """
    (w1, b1), (w2, b2), (w3, b3), (w4, b4) = params
    twoD, H1 = w1.shape
    H2, C1 = w2.shape[1], w3.shape[1]
    assert w2.shape[0] == H1 and w3.shape[0] == H2
    assert w4.shape[0] == C1 and w4.shape[1] == 1

    wcol = _round_up(max(H1, H2, C1), 128)       # lane-dense 128-wide sections
    o2 = _round_up(twoD, _ROW_ALIGN)
    o3 = o2 + wcol
    total = o3 + wcol

    wp = jnp.zeros((total, wcol), jnp.bfloat16)
    wp = wp.at[0:twoD, :H1].set(w1.astype(jnp.bfloat16))
    wp = wp.at[o2:o2 + H1, :H2].set(w2.astype(jnp.bfloat16))
    wp = wp.at[o3:o3 + H2, :C1].set(w3.astype(jnp.bfloat16))

    bp = jnp.zeros((8, wcol), jnp.float32)
    bp = bp.at[0, :H1].set(b1[0].astype(jnp.float32))
    bp = bp.at[1, :H2].set(b2[0].astype(jnp.float32))
    bp = bp.at[2, :C1].set(b3[0].astype(jnp.float32))
    bp = bp.at[3, 0].set(b4[0, 0].astype(jnp.float32))
    bp = bp.at[4, :C1].set(w4[:, 0].astype(jnp.float32))   # head weights, f32 VPU path
    return wp, bp


@functools.partial(jax.jit, static_argnames=("batch_tile",))
def conp_hist_critic(observed, mask, wp, bp, *, batch_tile=128):
    """observed, mask: [B, T, obs_dim] f32; wp/bp from pack_params -> values [B] f32."""
    B, T, D = observed.shape
    twoD = 2 * D
    wcol = wp.shape[1]
    o2 = _round_up(twoD, _ROW_ALIGN)
    o3 = o2 + wcol
    assert wp.shape[0] == o3 + wcol and bp.shape == (8, wcol), "params not packed for this obs_dim"

    # Large batch tile (rows = T*TB per matmul) but keep >= 2 grid steps so the
    # "parallel" batch axis can shard across both v7x TensorCores.
    TB = min(_round_up(batch_tile, 8), _round_up(B, 8))
    while TB > 8 and _round_up(B, TB) // TB < 2:
        TB = _round_up(TB // 2, 8)
    Bp = _round_up(B, TB)
    nt = Bp // TB
    rows = T * TB

    # Wrapper glue (pure XLA): concat, pad batch, bf16 cast, and per-tile
    # time-major row layout (row ((i*T + t)*TB + b) = batch i*TB+b, time t) so
    # each grid step reads one contiguous (T*TB, 2D) block and the time mean
    # inside the kernel is plain slab adds.
    x = jnp.concatenate([observed, mask], axis=2).astype(jnp.bfloat16)
    if Bp != B:
        x = jnp.pad(x, ((0, Bp - B), (0, 0), (0, 0)))
    x2 = x.reshape(nt, TB, T, twoD).transpose(0, 2, 1, 3).reshape(nt * rows, twoD)

    kernel = functools.partial(_conp_hist_critic_kernel, T, TB, twoD, o2, o3, wcol)
    out = pl.pallas_call(
        kernel,
        grid=(nt,),
        in_specs=[
            pl.BlockSpec((rows, twoD), lambda i: (i, 0)),   # streamed batch tile
            pl.BlockSpec(wp.shape, lambda i: (0, 0)),       # resident packed weights (bf16)
            pl.BlockSpec(bp.shape, lambda i: (0, 0)),       # resident biases + head (f32)
        ],
        out_specs=pl.BlockSpec((TB, 1), lambda i: (i, 0)),
        out_shape=jax.ShapeDtypeStruct((Bp, 1), jnp.float32),
        compiler_params=pltpu.CompilerParams(
            dimension_semantics=("parallel",)),  # batch tiles shard across TCs (v7x)
    )(x2, wp, bp)
    return out[:B, 0]   # drop batch padding, .squeeze(dim=1)


def init_params(key, obs_dim, hist_embed_dims=(64, 32), critic_layers=(32,)):
    """Deterministic Linear params; weights stored as [in, out], bias [1, out]."""
    hist_dim = 2 * obs_dim
    embed_dims = [hist_dim] + list(hist_embed_dims)
    critic_dims = [hist_embed_dims[-1]] + list(critic_layers) + [1]
    layer_dims = (list(zip(embed_dims[:-1], embed_dims[1:]))
                  + list(zip(critic_dims[:-1], critic_dims[1:])))
    params = []
    for fan_in, fan_out in layer_dims:
        key, kw, kb = jax.random.split(key, 3)
        scale = 1.0 / jnp.sqrt(jnp.float32(fan_in))
        w = jax.random.uniform(kw, (fan_in, fan_out), jnp.float32, -scale, scale)
        b = jax.random.uniform(kb, (1, fan_out), jnp.float32, -scale, scale)
        params.append((w, b))
    return params


def _bf16(a):
    return a.astype(jnp.bfloat16).astype(jnp.float32)


def reference_f32(observed, mask, params):
    """Pure-f32 JAX reference mirroring the PyTorch forward."""
    x = jnp.concatenate([observed, mask], axis=2)
    (w1, b1), (w2, b2), (w3, b3), (w4, b4) = params
    h = jnp.maximum(x @ w1 + b1, 0.0)
    h = jnp.maximum(h @ w2 + b2, 0.0)
    e = h.mean(axis=1)
    c = jnp.maximum(e @ w3 + b3, 0.0)
    return (c @ w4 + b4)[:, 0]


def reference_matched(observed, mask, params):
    """Reference mirroring the kernel's precision: bf16 MXU inputs, f32
    accumulation / VPU path, f32 width-1 head."""
    x = _bf16(jnp.concatenate([observed, mask], axis=2))
    (w1, b1), (w2, b2), (w3, b3), (w4, b4) = params
    h = _bf16(jnp.maximum(x @ _bf16(w1) + b1, 0.0))
    h = jnp.maximum(h @ _bf16(w2) + b2, 0.0)
    e = _bf16(h.mean(axis=1))
    c = jnp.maximum(e @ _bf16(w3) + b3, 0.0)
    return (c @ w4 + b4)[:, 0]                 # head stays f32 (VPU in the kernel)


if __name__ == "__main__":
    key = jax.random.PRNGKey(0)
    k_obs, k_mask, k_par, k_obs2, k_mask2 = jax.random.split(key, 5)

    B, T, D = 16, 8, 16          # batch, history length, observation_dim
    observed = jax.random.normal(k_obs, (B, T, D), jnp.float32)
    mask = (jax.random.uniform(k_mask, (B, T, D)) > 0.5).astype(jnp.float32)
    params = init_params(k_par, D)
    wp, bp = pack_params(params)   # packed ONCE, outside the per-call path

    values = jax.block_until_ready(conp_hist_critic(observed, mask, wp, bp))
    assert values.shape == (B,), values.shape
    ref_m = reference_matched(observed, mask, params)   # same precision recipe
    assert jnp.allclose(values, ref_m, atol=2e-3, rtol=2e-3), (values, ref_m)
    ref_f = reference_f32(observed, mask, params)       # original f32 semantics
    assert jnp.allclose(values, ref_f, atol=5e-2, rtol=5e-2), (values, ref_f)

    # Larger batch: exercises the TB=128 tile (rows = 1024 per step, 2 grid steps).
    B2 = 256
    observed2 = jax.random.normal(k_obs2, (B2, T, D), jnp.float32)
    mask2 = (jax.random.uniform(k_mask2, (B2, T, D)) > 0.5).astype(jnp.float32)
    values2 = jax.block_until_ready(conp_hist_critic(observed2, mask2, wp, bp))
    assert values2.shape == (B2,), values2.shape
    ref2 = reference_matched(observed2, mask2, params)
    assert jnp.allclose(values2, ref2, atol=2e-3, rtol=2e-3), (values2, ref2)

    print("KERNEL_OK")
</pallas_src>

<mosaic_0001>
module attributes {stable_mosaic.version = 11 : i64} {
  func.func @_conp_hist_critic_kernel(%arg0: i32, %arg1: memref<64x32xbf16, #tpu.memory_space<vmem>>, %arg2: memref<288x128xbf16, #tpu.memory_space<vmem>>, %arg3: memref<8x128xf32, #tpu.memory_space<vmem>>, %arg4: memref<8x1xf32, #tpu.memory_space<vmem>>) attributes {dimension_semantics = [#tpu.dimension_semantics<parallel>], iteration_bounds = array<i64: 2>, scalar_prefetch = 0 : i64, scratch_operands = 0 : i64, tpu.core_type = #tpu.core_type<tc>, window_params = [{transform_indices = @transform_0, window_bounds = array<i64: 64, 32>}, {pipeline_mode = #tpu.pipeline_mode<synchronous>, transform_indices = @transform_1, window_bounds = array<i64: 288, 128>}, {pipeline_mode = #tpu.pipeline_mode<synchronous>, transform_indices = @transform_2, window_bounds = array<i64: 8, 128>}, {transform_indices = @transform_3, window_bounds = array<i64: 8, 1>}]} {
    %c0 = arith.constant 0 : index
    %c0_0 = arith.constant 0 : index
    %0 = vector.load %arg1[%c0, %c0_0] : memref<64x32xbf16, #tpu.memory_space<vmem>>, vector<64x32xbf16>
    %c0_1 = arith.constant 0 : index
    %c0_2 = arith.constant 0 : index
    %1 = vector.load %arg3[%c0_1, %c0_2] : memref<8x128xf32, #tpu.memory_space<vmem>>, vector<8x128xf32>
    %c0_3 = arith.constant 0 : index
    %c0_4 = arith.constant 0 : index
    %2 = vector.load %arg2[%c0_3, %c0_4] : memref<288x128xbf16, #tpu.memory_space<vmem>>, vector<32x128xbf16>
    %cst = arith.constant dense<0.000000e+00> : vector<64x128xf32>
    %3 = tpu.matmul %0, %2, %cst {dimension_numbers = #tpu.dot_dimension_numbers<[1], [0], [0], [1], [0, 0, 1, 1], [], []>} : vector<64x32xbf16>, vector<32x128xbf16>, vector<64x128xf32> -> vector<64x128xf32>
    %4 = vector.extract_strided_slice %1 {offsets = [0, 0], sizes = [1, 128], strides = [1, 1]} : vector<8x128xf32> to vector<1x128xf32>
    %5 = vector.broadcast %4 : vector<1x128xf32> to vector<64x128xf32>
    %6 = arith.addf %3, %5 : vector<64x128xf32>
    %cst_5 = arith.constant 0.000000e+00 : f32
    %7 = vector.broadcast %cst_5 : f32 to vector<64x128xf32>
    %8 = arith.maximumf %6, %7 : vector<64x128xf32>
    %9 = arith.truncf %8 : vector<64x128xf32> to vector<64x128xbf16>
    %c32 = arith.constant 32 : index
    %c0_6 = arith.constant 0 : index
    %10 = vector.load %arg2[%c32, %c0_6] : memref<288x128xbf16, #tpu.memory_space<vmem>>, vector<128x128xbf16>
    %cst_7 = arith.constant dense<0.000000e+00> : vector<64x128xf32>
    %11 = tpu.matmul %9, %10, %cst_7 {dimension_numbers = #tpu.dot_dimension_numbers<[1], [0], [0], [1], [0, 0, 1, 1], [], []>} : vector<64x128xbf16>, vector<128x128xbf16>, vector<64x128xf32> -> vector<64x128xf32>
    %12 = vector.extract_strided_slice %1 {offsets = [1, 0], sizes = [1, 128], strides = [1, 1]} : vector<8x128xf32> to vector<1x128xf32>
    %13 = vector.broadcast %12 : vector<1x128xf32> to vector<64x128xf32>
    %14 = arith.addf %11, %13 : vector<64x128xf32>
    %cst_8 = arith.constant 0.000000e+00 : f32
    %15 = vector.broadcast %cst_8 : f32 to vector<64x128xf32>
    %16 = arith.maximumf %14, %15 : vector<64x128xf32>
    %17 = vector.extract_strided_slice %16 {offsets = [0, 0], sizes = [8, 128], strides = [1, 1]} : vector<64x128xf32> to vector<8x128xf32>
    %18 = vector.extract_strided_slice %16 {offsets = [8, 0], sizes = [8, 128], strides = [1, 1]} : vector<64x128xf32> to vector<8x128xf32>
    %19 = arith.addf %17, %18 : vector<8x128xf32>
    %20 = vector.extract_strided_slice %16 {offsets = [16, 0], sizes = [8, 128], strides = [1, 1]} : vector<64x128xf32> to vector<8x128xf32>
    %21 = arith.addf %19, %20 : vector<8x128xf32>
    %22 = vector.extract_strided_slice %16 {offsets = [24, 0], sizes = [8, 128], strides = [1, 1]} : vector<64x128xf32> to vector<8x128xf32>
    %23 = arith.addf %21, %22 : vector<8x128xf32>
    %24 = vector.extract_strided_slice %16 {offsets = [32, 0], sizes = [8, 128], strides = [1, 1]} : vector<64x128xf32> to vector<8x128xf32>
    %25 = arith.addf %23, %24 : vector<8x128xf32>
    %26 = vector.extract_strided_slice %16 {offsets = [40, 0], sizes = [8, 128], strides = [1, 1]} : vector<64x128xf32> to vector<8x128xf32>
    %27 = arith.addf %25, %26 : vector<8x128xf32>
    %28 = vector.extract_strided_slice %16 {offsets = [48, 0], sizes = [8, 128], strides = [1, 1]} : vector<64x128xf32> to vector<8x128xf32>
    %29 = arith.addf %27, %28 : vector<8x128xf32>
    %30 = vector.extract_strided_slice %16 {offsets = [56, 0], sizes = [8, 128], strides = [1, 1]} : vector<64x128xf32> to vector<8x128xf32>
    %31 = arith.addf %29, %30 : vector<8x128xf32>
    %cst_9 = arith.constant 1.250000e-01 : f32
    %32 = vector.broadcast %cst_9 : f32 to vector<8x128xf32>
    %33 = arith.mulf %31, %32 : vector<8x128xf32>
    %34 = arith.truncf %33 : vector<8x128xf32> to vector<8x128xbf16>
    %c160 = arith.constant 160 : index
    %c0_10 = arith.constant 0 : index
    %35 = vector.load %arg2[%c160, %c0_10] : memref<288x128xbf16, #tpu.memory_space<vmem>>, vector<128x128xbf16>
    %cst_11 = arith.constant dense<0.000000e+00> : vector<8x128xf32>
    %36 = tpu.matmul %34, %35, %cst_11 {dimension_numbers = #tpu.dot_dimension_numbers<[1], [0], [0], [1], [0, 0, 1, 1], [], []>} : vector<8x128xbf16>, vector<128x128xbf16>, vector<8x128xf32> -> vector<8x128xf32>
    %37 = vector.extract_strided_slice %1 {offsets = [2, 0], sizes = [1, 128], strides = [1, 1]} : vector<8x128xf32> to vector<1x128xf32>
    %38 = vector.broadcast %37 : vector<1x128xf32> to vector<8x128xf32>
    %39 = arith.addf %36, %38 : vector<8x128xf32>
    %cst_12 = arith.constant 0.000000e+00 : f32
    %40 = vector.broadcast %cst_12 : f32 to vector<8x128xf32>
    %41 = arith.maximumf %39, %40 : vector<8x128xf32>
    %42 = vector.extract_strided_slice %1 {offsets = [4, 0], sizes = [1, 128], strides = [1, 1]} : vector<8x128xf32> to vector<1x128xf32>
    %43 = vector.broadcast %42 : vector<1x128xf32> to vector<8x128xf32>
    %44 = arith.mulf %41, %43 : vector<8x128xf32>
    %cst_13 = arith.constant dense<0.000000e+00> : vector<8xf32>
    %45 = vector.multi_reduction <add>, %44, %cst_13 [1] : vector<8x128xf32> to vector<8xf32>
    %46 = vector.shape_cast %45 : vector<8xf32> to vector<8x1xf32>
    %47 = vector.extract_strided_slice %1 {offsets = [3, 0], sizes = [1, 1], strides = [1, 1]} : vector<8x128xf32> to vector<1x1xf32>
    %48 = vector.broadcast %47 : vector<1x1xf32> to vector<8x1xf32>
    %49 = arith.addf %46, %48 : vector<8x1xf32>
    %c0_14 = arith.constant 0 : index
    %c0_15 = arith.constant 0 : index
    %50 = vector.load %arg4[%c0_14, %c0_15] : memref<8x1xf32, #tpu.memory_space<vmem>>, vector<8x1xf32>
    tpu.vector_store %arg4[%c0_14, %c0_15], %49 {strides = array<i32>} : memref<8x1xf32, #tpu.memory_space<vmem>>, vector<8x1xf32>,
    return
  }
  func.func @transform_0(%arg0: i32) -> (i32, i32) {
    %c0_i32 = arith.constant 0 : i32
    %c0_i32_0 = arith.constant 0 : i32
    return %arg0, %c0_i32 : i32, i32
  }
  func.func @transform_1(%arg0: i32) -> (i32, i32) {
    %c0_i32 = arith.constant 0 : i32
    %c0_i32_0 = arith.constant 0 : i32
    %c0_i32_1 = arith.constant 0 : i32
    return %c0_i32, %c0_i32_0 : i32, i32
  }
  func.func @transform_2(%arg0: i32) -> (i32, i32) {
    %c0_i32 = arith.constant 0 : i32
    %c0_i32_0 = arith.constant 0 : i32
    %c0_i32_1 = arith.constant 0 : i32
    return %c0_i32, %c0_i32_0 : i32, i32
  }
  func.func @transform_3(%arg0: i32) -> (i32, i32) {
    %c0_i32 = arith.constant 0 : i32
    %c0_i32_0 = arith.constant 0 : i32
    return %arg0, %c0_i32 : i32, i32
  }
}

</mosaic_0001>

<bundles_post_ra>
// kernel: conp_hist_critic.1
= control target key start
LH: loop header
LB: loop body
LE: loop exit
PB: predicated region body
PF: predicated region fallthrough
CT: control target
= control target key end

     0   :  { %s818_s12 = smov 0   ;;  %s915_s0 = inlined_call_operand.vmem [shape: bf16[128,32], index: 0, kind: input, shape index: {}]   ;;  %s916_s1 = inlined_call_operand.vmem [shape: bf16[288,128], index: 1, kind: input, shape index: {}]   ;;  %s917_s2 = inlined_call_operand.vmem [shape: f32[8,128], index: 2, kind: input, shape index: {}]   ;;  %s918_s3 = inlined_call_operand.vmem [shape: f32[16,1], index: 3, kind: output, shape index: {}]  }
   0x1 LB: > { %s824_s13 = sadd.s32 4294967295, %s794_s12   ;;  %p641_p0 = scmp.ge.s32.totalorder %s794_s12, 1  ;;  %s794_s12 = sphi %s818_s12, %s13_s12  }
   0x2   : > { %p138_p1 = scmp.lt.s32.totalorder %s794_s12, 3 }
   0x4   : > { %p139_p2 = pnand %p641_p0, %p138_p1 }
   0x5   : > { %v766_v0 = vld [vmem:[%s916_s1] sm:$0xff] (!%p139_p2)   ;;  %s642_s16 = sshll.u32 (!%p139_p2), %s824_s13, 3  ;;  %v767_v1 = vld [vmem:[%s916_s1 + $0x8] sm:$0xff] (!%p139_p2)   ;;  %v772_v2 = vld [vmem:[%s916_s1 + $0x10] sm:$0xff] (!%p139_p2)   ;;  %vm221_vm0 = vcmask (!%p139_p2), 261120   ;;  %v796_v15 = vmov (!%p139_p2), 0.0   ;;  %v185_v17 = vlaneseq (!%p139_p2) }
   0x6   : > { %142 = sbr.rel (%p139_p2) target bundleno = 840 (0x348), region = 32  ;;  %p162_p3 = scmp.lt.s32.totalorder (!%p139_p2), %s642_s16, 15  ;;  %700 = vmatprep.subr.bf16.mxu0 (!%p139_p2), %v766_v0  ;;  %v773_v3 = vld [vmem:[%s916_s1 + $0x18] sm:$0xff] (!%p139_p2)   ;;  %712 = vmatprep.subr.bf16.mxu1 (!%p139_p2), %v772_v2  ;;  %v774_v4 = vld [vmem:[%s916_s1 + $0x20] sm:$0xff] (!%p139_p2)   ;;  %v775_v8 = vld [vmem:[%s916_s1 + $0x28] sm:$0xff] (!%p139_p2)   ;;  %vm797_vm1 = vmmov (!%p139_p2), 0  }
   0x7   : > { %701 = vmatpush3.bf16.msra.mxu0 (!%p139_p2), %v766_v0  ;;  %713 = vmatpush3.bf16.msra.mxu1 (!%p139_p2), %v772_v2  ;;  %v776_v10 = vld [vmem:[%s916_s1 + $0x30] sm:$0xff] (!%p139_p2)   ;;  %v777_v11 = vld [vmem:[%s916_s1 + $0x38] sm:$0xff] (!%p139_p2)   ;;  %v778_v12 = vld [vmem:[%s916_s1 + $0x40] sm:$0xff] (!%p139_p2)   ;;  %v872_v18 = vshrl.u32 (!%p139_p2), %v185_v17, 7  ;;  %p167_p4 = scmp.lt.s32.totalorder (!%p139_p2), %s824_s13, 1  ;;  %vm582_vm2 = vcmask (!%p139_p2), 7168  }
   0x8   : > { %702 = vmatprep.subr.bf16.mxu0 (!%p139_p2), %v767_v1  ;;  %714 = vmatprep.subr.bf16.mxu1 (!%p139_p2), %v773_v3  ;;  %v779_v13 = vld [vmem:[%s916_s1 + $0x48] sm:$0xff] (!%p139_p2)   ;;  %v780_v14 = vld [vmem:[%s916_s1 + $0x50] sm:$0xff] (!%p139_p2)   ;;  %v781_v16 = vld [vmem:[%s916_s1 + $0x58] sm:$0xff] (!%p139_p2)  }
   0x9   : > { %v187_v19 = vsub.s32 (!%p139_p2), 0, %v872_v18  ;;  %v878_v20 = vld [vmem:[%s917_s2] sm:$0xff] (!%p139_p2)  ;;  %v783_v51 = vld [vmem:[%s916_s1 + $0x68] sm:$0xff] (!%p139_p2)   ;;  %v784_v52 = vld [vmem:[%s916_s1 + $0x70] sm:$0xff] (!%p139_p2)   ;;  %v329_v56 = vsub.s32 (!%p139_p2), 1, %v872_v18 }
   0xa   : > { %v782_v50 = vld [vmem:[%s916_s1 + $0x60] sm:$0xff] (!%p139_p2)   ;;  %v785_v53 = vld [vmem:[%s916_s1 + $0x78] sm:$0xff] (!%p139_p2)   ;;  %v787_v55 = vld [vmem:[%s916_s1 + $0x88] sm:$0xff] (!%p139_p2)  }
   0xb   : > { %703 = vmatpush3.bf16.msra.mxu0 (!%p139_p2), %v767_v1  ;;  %715 = vmatpush3.bf16.msra.mxu1 (!%p139_p2), %v773_v3  ;;  %v188_v21 = vrot.slane (!%p139_p2), %v878_v20, %v187_v19  ;;  %v786_v54 = vld [vmem:[%s916_s1 + $0x80] sm:$0xff] (!%p139_p2)   ;;  %v330_v57 = vrot.slane (!%p139_p2), %v878_v20, %v329_v56 }
   0xc   : > { %716 = vmatprep.subr.bf16.mxu1 (!%p139_p2), %v774_v4  ;;  %736 = vmatprep.subr.bf16.mxu0 (!%p139_p2), %v796_v15 }
   0xd   : > { %s920_s16 = smov (!%p162_p3, %s642_s16), 15  ;;  %s922_s13 = smov (!%p167_p4, %s824_s13), 1 }
   0xe   : > { %s643_s23 = sshll.u32 %s920_s16, 2  ;;  %s644_s5 = sshll.u32 %s922_s13, 3 }
   0xf   : > { %s165_s26 = scalar_lea.vmem %s915_s0, %s643_s23  ;;  %717 = vmatpush3.bf16.msra.mxu1 %v774_v4  ;;  %s170_s8 = scalar_lea.vmem %s918_s3, %s644_s5 }
  0x10   : > { %v768_v5 = vld [vmem:[%s165_s26] sm:$0xff]   ;;  %v769_v6 = vld [vmem:[%s165_s26 + $0x8] sm:$0xff]   ;;  %v770_v7 = vld [vmem:[%s165_s26 + $0x10] sm:$0xff]   ;;  %718 = vmatprep.subr.bf16.mxu1 %v775_v8 }
  0x11   : > { %704 = vmatprep.mubr.msk.bf16.mxu0 %vm221_vm0, %v768_v5  ;;  %v771_v9 = vld [vmem:[%s165_s26 + $0x18] sm:$0xff]  }
  0x12   : > { %705 = vmatmul.mubr.msk.bf16.vlgmr.msra.gmra.mrb[0].mxu0 %vm221_vm0, %v769_v6 }
  0x13   : > { %708 = vmatprep.mubr.msk.bf16.mxu0 %vm221_vm0, %v770_v7  ;;  %719 = vmatpush3.bf16.msra.mxu1 %v775_v8 }
  0x14   : > { %720 = vmatprep.subr.bf16.mxu1 %v776_v10  ;;  %737 = vmatpush3.bf16.msra.mxu0 %v780_v14 }
  0x15   : > { %738 = vmatprep.subr.bf16.mxu0 %v796_v15 }
  0x17   : > { %721 = vmatpush3.bf16.msra.mxu1 %v776_v10 }
  0x18   : > { %722 = vmatprep.subr.bf16.mxu1 %v777_v11  ;;  %739 = vmatpush3.bf16.msra.mxu0 %v781_v16 }
  0x19   : > { %740 = vmatprep.subr.bf16.mxu0 %v796_v15 }
  0x1a   : > { %709 = vmatmul.mubr.msk.bf16.gmra.mrb[4].mxu0 %vm221_vm0, %v771_v9 }
  0x1b   : > { %723 = vmatpush3.bf16.msra.mxu1 %v777_v11  ;;  %752 = vmatprep.mubr.msk.bf16.mxu0 %vm797_vm1, %v796_v15 }
  0x1c   : > { %724 = vmatprep.subr.bf16.mxu1 %v778_v12  ;;  %741 = vmatpush3.bf16.msra.mxu0 %v782_v50 }
  0x1d   : > { %742 = vmatprep.subr.bf16.mxu0 %v796_v15 }
  0x1f   : > { %725 = vmatpush3.bf16.msra.mxu1 %v778_v12 }
  0x20   : > { %726 = vmatprep.subr.bf16.mxu1 %v779_v13  ;;  %743 = vmatpush3.bf16.msra.mxu0 %v783_v51 }
  0x21   : > { %744 = vmatprep.subr.bf16.mxu0 %v796_v15 }
  0x23   : > { %727 = vmatpush3.bf16.msra.mxu1 %v779_v13 }
  0x24   : > { %745 = vmatpush3.bf16.msra.mxu0 %v784_v52 }
  0x25   : > { %746 = vmatprep.subr.bf16.mxu0 %v796_v15 }
  0x28   : > { %747 = vmatpush3.bf16.msra.mxu0 %v785_v53 }
  0x29   : > { %748 = vmatprep.subr.bf16.mxu0 %v796_v15 }
  0x2c   : > { %749 = vmatpush3.bf16.msra.mxu0 %v786_v54 }
  0x2d   : > { %750 = vmatprep.subr.bf16.mxu0 %v796_v15 }
  0x30   : > { %751 = vmatpush3.bf16.msra.mxu0 %v787_v55 }
  0xe5   : > { %v706_v22 = vpop.f32.mrb[0].mxu0 }
  0xe6   : > { %v277_v23 = vadd.f32 %v706_v22, %v188_v21  ;;  %v268_v24 = vpop.f32.mrb[1].mxu0 }
  0xe7   : > { %v269_v25 = vadd.f32 %v268_v24, %v188_v21  ;;  %v707_v26 = vpop.f32.mrb[2].mxu0 }
  0xe8   : > { %v280_v27 = vadd.f32 %v707_v26, %v188_v21  ;;  %v271_v28 = vpop.f32.mrb[3].mxu0  ;;  %v301_v30 = vmax.f32 %v277_v23, 0.0 }
  0xe9   : > { %v272_v29 = vadd.f32 %v271_v28, %v188_v21  ;;  %v299_v32 = vmax.f32 %v269_v25, 0.0 }
  0xea   : > { %v302_v31 = vmax.f32 %v280_v27, 0.0 }
  0xeb   : > { %v300_v33 = vmax.f32 %v272_v29, 0.0  ;;  %v479_v29 = vsub.s32 2, %v872_v18 }
  0xec   : > { %v308_v34 = vpack.c.bf16 %v302_v31, %v301_v30  ;;  %v572_v31 = vsub.s32 4, %v872_v18 }
  0xed   : > { %v710_v35 = vpop.f32.mrb[4].mxu0  ;;  %v307_v36 = vpack.c.bf16 %v300_v33, %v299_v32  ;;  %v480_v30 = vrot.slane %v878_v20, %v479_v29 }
  0xee   : > { %v293_v37 = vadd.f32 %v710_v35, %v188_v21  ;;  %v284_v38 = vpop.f32.mrb[5].mxu0  ;;  %v573_v35 = vrot.slane %v878_v20, %v572_v31 }
  0xef   : > { %v285_v39 = vadd.f32 %v284_v38, %v188_v21  ;;  %v711_v40 = vpop.f32.mrb[6].mxu0  ;;  %728 = vmatprep.mubr.bf16.mxu1 %v307_v36 }
  0xf0   : > { %v296_v41 = vadd.f32 %v711_v40, %v188_v21  ;;  %v287_v42 = vpop.f32.mrb[7].mxu0  ;;  %729 = vmatmul.mubr.bf16.vlgmr.msra.gmra.mrb[0].mxu1 %v308_v34  ;;  %v305_v44 = vmax.f32 %v293_v37, 0.0  ;;  %v579_v40 = vsub.s32 3, %v872_v18 }
  0xf1   : > { %v288_v43 = vadd.f32 %v287_v42, %v188_v21  ;;  %v303_v46 = vmax.f32 %v285_v39, 0.0 }
  0xf2   : > { %v306_v45 = vmax.f32 %v296_v41, 0.0  ;;  %v580_v41 = vrot.slane %v878_v20, %v579_v40 }
  0xf3   : > { %v304_v47 = vmax.f32 %v288_v43, 0.0 }
  0xf4   : > { %v310_v48 = vpack.c.bf16 %v306_v45, %v305_v44 }
  0xf5   : > { %v309_v49 = vpack.c.bf16 %v304_v47, %v303_v46 }
  0xf7   : > { %732 = vmatprep.mubr.bf16.mxu1 %v309_v49 }
  0xf8   : > { %733 = vmatmul.mubr.bf16.gmra.mrb[4].mxu1 %v310_v48 }
 0x1c3   : > { %v730_v58 = vpop.f32.mrb[0].mxu1 }
 0x1c4   : > { %v413_v59 = vpop.f32.mrb[1].mxu1  ;;  %v422_v63 = vadd.f32 %v730_v58, %v330_v57 }
 0x1c5   : > { %v414_v60 = vadd.f32 %v413_v59, %v330_v57  ;;  %v731_v61 = vpop.f32.mrb[2].mxu1 }
 0x1c6   : > { %v416_v62 = vpop.f32.mrb[3].mxu1  ;;  %v425_v2 = vadd.f32 %v731_v61, %v330_v57  ;;  %v446_v4 = vmax.f32 %v422_v63, 0.0 }
 0x1c7   : > { %v417_v0 = vadd.f32 %v416_v62, %v330_v57  ;;  %v444_v1 = vmax.f32 %v414_v60, 0.0 }
 0x1c8   : > { %v447_v8 = vmax.f32 %v425_v2, 0.0 }
 0x1c9   : > { %v445_v3 = vmax.f32 %v417_v0, 0.0 }
 0x1cb   : > { %v452_v5 = vadd.f32 %v445_v3, %v444_v1  ;;  %v734_v6 = vpop.f32.mrb[4].mxu1 }
 0x1cc   : > { %v429_v7 = vpop.f32.mrb[5].mxu1  ;;  %v438_v13 = vadd.f32 %v734_v6, %v330_v57 }
 0x1cd   : > { %v453_v9 = vadd.f32 %v452_v5, %v446_v4  ;;  %v430_v10 = vadd.f32 %v429_v7, %v330_v57  ;;  %v735_v11 = vpop.f32.mrb[6].mxu1 }
 0x1ce   : > { %v432_v12 = vpop.f32.mrb[7].mxu1  ;;  %v441_v19 = vadd.f32 %v735_v11, %v330_v57  ;;  %v450_v22 = vmax.f32 %v438_v13, 0.0 }
 0x1cf   : > { %v448_v14 = vmax.f32 %v430_v10, 0.0  ;;  %v454_v15 = vadd.f32 %v453_v9, %v447_v8  ;;  %v433_v16 = vadd.f32 %v432_v12, %v330_v57 }
 0x1d0   : > { %v451_v24 = vmax.f32 %v441_v19, 0.0 }
 0x1d1   : > { %v455_v17 = vadd.f32 %v454_v15, %v448_v14  ;;  %v449_v21 = vmax.f32 %v433_v16, 0.0 }
 0x1d3   : > { %v456_v23 = vadd.f32 %v455_v17, %v449_v21 }
 0x1d5   : > { %v457_v25 = vadd.f32 %v456_v23, %v450_v22 }
 0x1d7   : > { %v458_v26 = vadd.f32 %v457_v25, %v451_v24 }
 0x1d9   : > { %v459_v27 = vmul.f32 0.125, %v458_v26 }
 0x1db   : > { %v460_v28 = vpack.c.bf16 %v459_v27, %v459_v27 }
 0x1dd   : > { %753 = vmatmul.mubr.bf16.vlgmr.msra.gmra.mrb[8].mxu0 %v460_v28 }
 0x2b0   : > { %v563_v32 = vpop.f32.mrb[8].mxu0 }
 0x2b1   : > { %v564_v33 = vadd.f32 %v563_v32, %v480_v30  ;;  %v754_v34 = vpop.f32.mrb[9].mxu0 }
 0x2b2   : > { %v566_v36 = vpop.f32.mrb[10].mxu0 }
 0x2b3   : > { %v569_v37 = vmax.f32 %v564_v33, 0.0  ;;  %v755_v38 = vpop.f32.mrb[11].mxu0 }
 0x2b5   : > { %v574_v39 = vmul.f32 %v573_v35, %v569_v37 }
 0x2b7   : > { %575 = vadd.xlane.f32.xlu0 %v574_v39 }
 0x344   : > { %v576_v42 = vpop.xlane.xlu0 %575 }
 0x345   : > { %v581_v43 = vadd.f32 %v580_v41, %v576_v42 }
 0x347   : > { %583 = vst.msk [vmem:[%s170_s8] sm:$0xff] %vm582_vm2, %v581_v43 }
 0x348 PF: > { %s13_s12 = sadd.s32 1, %s794_s12  }
 0x349   : > { %p10_p5 = scmp.ge.s32.totalorder %s13_s12, 4  }
 0x34b   :  { %12 = sbr.rel (!%p10_p5) target bundleno = 1 (0x1), region = 62 }

</bundles_post_ra>
